<compile_context>
chip_gen: v6e
topology: v6e:2x2x1
jax: 0.10.0
libtpu: 0.0.40
codegen_flags: <defaults>
</compile_context>

<pallas_src>
import functools

import jax
import jax.numpy as jnp
from jax.experimental import pallas as pl
from jax.experimental.pallas import tpu as pltpu


def _policy_head_kernel(x_ref, wpg_ref, wd_ref, wc2_ref, bias_ref, out_ref,
                        *, chead, nout, tb, hw):
    # x_ref:   (Cin, tb*hw)     channels on sublanes, batch*spatial on lanes
    # wpg_ref: (2*chead, Cin)   rows [0:chead] = folded Pconv, [chead:] = folded Gconv
    # wd_ref:  (chead, 2*chead) folded dense weight (cols [0:chead]=mean, [chead:]=max)
    # wc2_ref: (nout, chead)    conv2.conv 1x1 weight
    # bias_ref:(chead, 2)       col 0 = folded Gconv bias, col 1 = combined p-path bias
    # out_ref: (nout, tb*hw)
    inv_hw = jnp.float32(1.0 / hw)

    x = x_ref[...]                                               # (Cin, tb*hw)
    # One MXU pass for both 1x1 convs over the whole tb-batch.
    pg = jnp.dot(wpg_ref[...], x,
                 preferred_element_type=jnp.float32)             # (2*chead, tb*hw)

    bg = bias_ref[:, 0:1]                                        # (chead, 1)
    bc = bias_ref[:, 1:2]                                        # (chead, 1)

    # --- G path: ReLU then per-batch mean/max pooling over spatial lanes. ---
    g = jnp.maximum(pg[chead:2 * chead, :] + bg, 0.0)            # (chead, tb*hw)
    g3 = g.reshape(chead, tb, hw)
    gmean = jnp.sum(g3, axis=-1) * inv_hw                        # (chead, tb)
    gmax = jnp.max(g3, axis=-1)                                  # (chead, tb)
    pooled = jnp.concatenate([gmean, gmax], axis=0)              # (2*chead, tb)

    # --- dense(cat([mean, max])) batched across tb in one MXU pass. ---------
    biases = jnp.dot(wd_ref[...], pooled,
                     preferred_element_type=jnp.float32) + bc    # (chead, tb)

    # --- P path: per-batch bias, folded-BN ReLU, 1x1 conv, softmax over HW. -
    p3 = pg[0:chead, :].reshape(chead, tb, hw)
    h = jnp.maximum(p3 + biases[:, :, None], 0.0)                # (chead, tb, hw)
    h2 = h.reshape(chead, tb * hw).astype(wc2_ref.dtype)
    logits = jnp.dot(wc2_ref[...], h2,
                     preferred_element_type=jnp.float32)         # (nout, tb*hw)

    l3 = logits.reshape(nout, tb, hw)
    m = jnp.max(l3, axis=-1, keepdims=True)
    e = jnp.exp(l3 - m)
    denom = jnp.sum(e, axis=-1, keepdims=True)
    out = e * pl.reciprocal(denom, approx=True)                  # EUP reciprocal
    out_ref[...] = out.reshape(nout, tb * hw)


def conv_policy_head(x_nchw, fp, *, tb=None, use_bf16=False, interpret=False):
    """x_nchw: (B, Cin, H, W) float32; fp: folded/packed params from fold_params."""
    B, Cin, H, W = x_nchw.shape
    HW = H * W
    chead = fp["wd"].shape[0]
    nout = fp["wc2"].shape[0]

    # Channels-major, batch-concatenated-on-lanes layout: (Cin, B*HW).
    # One wrapper transpose; cheap because Cin is small.
    x = jnp.transpose(x_nchw.reshape(B, Cin, HW), (1, 0, 2)).reshape(Cin, B * HW)

    in_dtype = jnp.bfloat16 if use_bf16 else jnp.float32
    x = x.astype(in_dtype)
    wpg = fp["wpg"].astype(in_dtype)
    wc2 = fp["wc2"].astype(in_dtype)
    wd = fp["wd"].astype(jnp.float32)        # tiny; keep elementwise math in f32
    bias = fp["bias"].astype(jnp.float32)

    # --- VMEM-budget-sized batch tile (no hard tb cap) -----------------------
    try:
        phys_vmem = int(pltpu.get_tpu_info().vmem_capacity_bytes)
    except Exception:
        phys_vmem = 64 << 20                                  # conservative (v7x-sized)
    vmem_limit = int(min(phys_vmem * 3 // 4, 96 << 20))       # ~48 MiB v7x, 96 MiB v5e/v6e
    block_budget = vmem_limit * 6 // 10                       # headroom for compiler temps

    itemsize = 2 if use_bf16 else 4
    # Rough per-batch-element VMEM bytes: double-buffered x/out blocks + f32 temps.
    per_b = HW * (2 * Cin * itemsize + 2 * nout * itemsize + (4 * chead + 4 * nout) * 4)

    if tb is None:
        if HW % 128 != 0:
            # TODO(synk): pad HW to a 128 multiple and mask pooling/softmax lanes;
            # until then fall back to a single full-batch block (always legal).
            tb = B
        else:
            tb_max = max(1, block_budget // per_b)
            cap = B // 2 if B >= 2 else B     # keep grid >= 2 (megacore sharding on v7x)
            cap = max(1, min(tb_max, cap))
            tb = max(t for t in range(1, cap + 1) if B % t == 0)
    assert B % tb == 0, (B, tb)
    grid = (B // tb,)

    kernel = functools.partial(_policy_head_kernel,
                               chead=chead, nout=nout, tb=tb, hw=HW)

    def _full(arr):
        return pl.BlockSpec(arr.shape, lambda i: (0,) * arr.ndim)

    out2d = pl.pallas_call(
        kernel,
        out_shape=jax.ShapeDtypeStruct((nout, B * HW), jnp.float32),
        grid_spec=pltpu.PrefetchScalarGridSpec(
            num_scalar_prefetch=0,
            grid=grid,
            in_specs=[
                pl.BlockSpec((Cin, tb * HW), lambda i: (0, i)),
                _full(wpg), _full(wd), _full(wc2), _full(bias),
            ],
            out_specs=pl.BlockSpec((nout, tb * HW), lambda i: (0, i)),
        ),
        compiler_params=pltpu.CompilerParams(
            dimension_semantics=("parallel",),
            vmem_limit_bytes=vmem_limit,
        ),
        interpret=interpret,
    )(x, wpg, wd, wc2, bias)

    # (nout, B*HW) -> (B, nout, HW): output is tiny, relayout outside the kernel.
    return jnp.transpose(out2d.reshape(nout, B, HW), (1, 0, 2))


def init_raw_params(key, cin, chead, nout):
    """Raw PyTorch-style parameters (conv weights squeezed to 2-D)."""
    ks = jax.random.split(key, 15)
    f = lambda k, shape, s=0.1: (s * jax.random.normal(k, shape)).astype(jnp.float32)
    return dict(
        wp=f(ks[0], (chead, cin), 0.3), bp=f(ks[1], (chead,)),
        wg=f(ks[2], (chead, cin), 0.3), bg=f(ks[3], (chead,)),
        g_gamma=1.0 + f(ks[4], (chead,)), g_beta=f(ks[5], (chead,)),
        g_mean=f(ks[6], (chead,)), g_var=jnp.abs(f(ks[7], (chead,))) + 0.5,
        wd=f(ks[8], (chead, 2 * chead), 0.2), bd=f(ks[9], (chead,)),
        b2_gamma=1.0 + f(ks[10], (chead,)), b2_beta=f(ks[11], (chead,)),
        b2_mean=f(ks[12], (chead,)), b2_var=jnp.abs(f(ks[13], (chead,))) + 0.5,
        wc2=f(ks[14], (nout, chead), 0.3),
    )


def fold_params(raw, eps=1e-5):
    """Fold BN scale/shift and biases into the weight matrices (exact algebra)."""
    gs = raw["g_gamma"] / jnp.sqrt(raw["g_var"] + eps)
    gsh = raw["g_beta"] - raw["g_mean"] * gs
    wg_f = raw["wg"] * gs[:, None]                 # Gconv folded with bnG
    bg_f = raw["bg"] * gs + gsh

    s2 = raw["b2_gamma"] / jnp.sqrt(raw["b2_var"] + eps)
    sh2 = raw["b2_beta"] - raw["b2_mean"] * s2
    wp_f = raw["wp"] * s2[:, None]                 # Pconv folded with conv2.bn scale
    wd_f = raw["wd"] * s2[:, None]                 # dense folded with conv2.bn scale
    bc = s2 * (raw["bp"] + raw["bd"]) + sh2        # combined p-path bias

    return dict(
        wpg=jnp.concatenate([wp_f, wg_f], axis=0).astype(jnp.float32),  # (2*chead, Cin)
        wd=wd_f.astype(jnp.float32),                                    # (chead, 2*chead)
        wc2=raw["wc2"].astype(jnp.float32),                             # (nout, chead)
        bias=jnp.stack([bg_f, bc], axis=1).astype(jnp.float32),         # (chead, 2)
    )


def reference(x_nchw, raw, eps=1e-5):
    """Pure-JAX (unfolded) inference-mode forward of the PyTorch module."""
    B, Cin, H, W = x_nchw.shape
    x = x_nchw.reshape(B, Cin, H * W)
    p = jnp.einsum("oc,bch->boh", raw["wp"], x) + raw["bp"][None, :, None]
    gpre = jnp.einsum("oc,bch->boh", raw["wg"], x) + raw["bg"][None, :, None]
    gs = raw["g_gamma"] / jnp.sqrt(raw["g_var"] + eps)
    gsh = raw["g_beta"] - raw["g_mean"] * gs
    g = jnp.maximum(gpre * gs[None, :, None] + gsh[None, :, None], 0.0)
    pooled = jnp.concatenate([g.mean(axis=2), g.max(axis=2)], axis=1)   # (B, 2*chead)
    biases = pooled @ raw["wd"].T + raw["bd"]                           # (B, chead)
    pb = p + biases[:, :, None]
    s2 = raw["b2_gamma"] / jnp.sqrt(raw["b2_var"] + eps)
    sh2 = raw["b2_beta"] - raw["b2_mean"] * s2
    h = jnp.maximum(pb * s2[None, :, None] + sh2[None, :, None], 0.0)
    logits = jnp.einsum("oc,bch->boh", raw["wc2"], h)                   # (B, nout, HW)
    return jax.nn.softmax(logits, axis=-1)


if __name__ == "__main__":
    key = jax.random.PRNGKey(0)
    kx, kw = jax.random.split(key)
    B, Cin, H, W = 2, 4, 16, 16
    chead, nout = 16, 2

    x = jax.random.normal(kx, (B, Cin, H, W), dtype=jnp.float32)
    raw = init_raw_params(kw, Cin, chead, nout)
    fp = fold_params(raw)

    out = conv_policy_head(x, fp)
    out = jax.block_until_ready(out)

    ref = reference(x, raw)
    assert out.shape == (B, nout, H * W), out.shape
    err = float(jnp.abs(out - ref).max())
    # approx=True EUP reciprocal -> slightly relaxed tolerance vs the f32 reference.
    assert jnp.allclose(out, ref, rtol=5e-3, atol=1e-3), err
    rowsum_err = float(jnp.abs(out.sum(axis=-1) - 1.0).max())
    assert rowsum_err < 5e-3, rowsum_err
    print("KERNEL_OK")
</pallas_src>

<mosaic_0001>
module attributes {stable_mosaic.version = 11 : i64} {
  func.func @_policy_head_kernel(%arg0: i32, %arg1: memref<4x256xf32, #tpu.memory_space<vmem>>, %arg2: memref<32x4xf32, #tpu.memory_space<vmem>>, %arg3: memref<16x32xf32, #tpu.memory_space<vmem>>, %arg4: memref<2x16xf32, #tpu.memory_space<vmem>>, %arg5: memref<16x2xf32, #tpu.memory_space<vmem>>, %arg6: memref<2x256xf32, #tpu.memory_space<vmem>>) attributes {dimension_semantics = [#tpu.dimension_semantics<parallel>], iteration_bounds = array<i64: 2>, scalar_prefetch = 0 : i64, scratch_operands = 0 : i64, tpu.core_type = #tpu.core_type<tc>, window_params = [{transform_indices = @transform_0, window_bounds = array<i64: 4, 256>}, {pipeline_mode = #tpu.pipeline_mode<synchronous>, transform_indices = @transform_1, window_bounds = array<i64: 32, 4>}, {pipeline_mode = #tpu.pipeline_mode<synchronous>, transform_indices = @transform_2, window_bounds = array<i64: 16, 32>}, {pipeline_mode = #tpu.pipeline_mode<synchronous>, transform_indices = @transform_3, window_bounds = array<i64: 2, 16>}, {pipeline_mode = #tpu.pipeline_mode<synchronous>, transform_indices = @transform_4, window_bounds = array<i64: 16, 2>}, {transform_indices = @transform_5, window_bounds = array<i64: 2, 256>}]} {
    %c0 = arith.constant 0 : index
    %c0_0 = arith.constant 0 : index
    %0 = vector.load %arg1[%c0, %c0_0] : memref<4x256xf32, #tpu.memory_space<vmem>>, vector<4x256xf32>
    %c0_1 = arith.constant 0 : index
    %c0_2 = arith.constant 0 : index
    %1 = vector.load %arg2[%c0_1, %c0_2] : memref<32x4xf32, #tpu.memory_space<vmem>>, vector<32x4xf32>
    %cst = arith.constant dense<0.000000e+00> : vector<32x256xf32>
    %2 = tpu.matmul %1, %0, %cst {dimension_numbers = #tpu.dot_dimension_numbers<[1], [0], [0], [1], [0, 0, 1, 1], [], []>} : vector<32x4xf32>, vector<4x256xf32>, vector<32x256xf32> -> vector<32x256xf32>
    %c0_3 = arith.constant 0 : index
    %c0_4 = arith.constant 0 : index
    %3 = vector.load %arg5[%c0_3, %c0_4] : memref<16x2xf32, #tpu.memory_space<vmem>>, vector<16x1xf32>
    %c0_5 = arith.constant 0 : index
    %c1 = arith.constant 1 : index
    %4 = vector.load %arg5[%c0_5, %c1] : memref<16x2xf32, #tpu.memory_space<vmem>>, vector<16x1xf32>
    %5 = vector.extract_strided_slice %2 {offsets = [16, 0], sizes = [16, 256], strides = [1, 1]} : vector<32x256xf32> to vector<16x256xf32>
    %6 = vector.broadcast %3 : vector<16x1xf32> to vector<16x256xf32>
    %7 = arith.addf %5, %6 : vector<16x256xf32>
    %cst_6 = arith.constant 0.000000e+00 : f32
    %8 = vector.broadcast %cst_6 : f32 to vector<16x256xf32>
    %9 = arith.maximumf %7, %8 : vector<16x256xf32>
    %10 = vector.shape_cast %9 : vector<16x256xf32> to vector<16x1x256xf32>
    %cst_7 = arith.constant dense<0.000000e+00> : vector<16x1xf32>
    %11 = vector.multi_reduction <add>, %10, %cst_7 [2] : vector<16x1x256xf32> to vector<16x1xf32>
    %cst_8 = arith.constant 3.906250e-03 : f32
    %12 = vector.broadcast %cst_8 : f32 to vector<16x1xf32>
    %13 = arith.mulf %11, %12 : vector<16x1xf32>
    %cst_9 = arith.constant dense<0xFF800000> : vector<16x1xf32>
    %14 = vector.multi_reduction <maximumf>, %10, %cst_9 [2] : vector<16x1x256xf32> to vector<16x1xf32>
    %15 = tpu.concatenate %13, %14 in 0 : vector<16x1xf32>, vector<16x1xf32> -> vector<32x1xf32>
    %c0_10 = arith.constant 0 : index
    %c0_11 = arith.constant 0 : index
    %16 = vector.load %arg3[%c0_10, %c0_11] : memref<16x32xf32, #tpu.memory_space<vmem>>, vector<16x32xf32>
    %cst_12 = arith.constant dense<0.000000e+00> : vector<16x1xf32>
    %17 = tpu.matmul %16, %15, %cst_12 {dimension_numbers = #tpu.dot_dimension_numbers<[1], [0], [0], [1], [0, 0, 1, 1], [], []>} : vector<16x32xf32>, vector<32x1xf32>, vector<16x1xf32> -> vector<16x1xf32>
    %18 = arith.addf %17, %4 : vector<16x1xf32>
    %19 = vector.extract_strided_slice %2 {offsets = [0, 0], sizes = [16, 256], strides = [1, 1]} : vector<32x256xf32> to vector<16x256xf32>
    %20 = vector.shape_cast %19 : vector<16x256xf32> to vector<16x1x256xf32>
    %21 = vector.shape_cast %18 : vector<16x1xf32> to vector<16x1x1xf32>
    %22 = vector.broadcast %21 : vector<16x1x1xf32> to vector<16x1x256xf32>
    %23 = arith.addf %20, %22 : vector<16x1x256xf32>
    %cst_13 = arith.constant 0.000000e+00 : f32
    %24 = vector.broadcast %cst_13 : f32 to vector<16x1x256xf32>
    %25 = arith.maximumf %23, %24 : vector<16x1x256xf32>
    %26 = vector.shape_cast %25 : vector<16x1x256xf32> to vector<16x256xf32>
    %c0_14 = arith.constant 0 : index
    %c0_15 = arith.constant 0 : index
    %27 = vector.load %arg4[%c0_14, %c0_15] : memref<2x16xf32, #tpu.memory_space<vmem>>, vector<2x16xf32>
    %cst_16 = arith.constant dense<0.000000e+00> : vector<2x256xf32>
    %28 = tpu.matmul %27, %26, %cst_16 {dimension_numbers = #tpu.dot_dimension_numbers<[1], [0], [0], [1], [0, 0, 1, 1], [], []>} : vector<2x16xf32>, vector<16x256xf32>, vector<2x256xf32> -> vector<2x256xf32>
    %29 = vector.shape_cast %28 : vector<2x256xf32> to vector<2x1x256xf32>
    %cst_17 = arith.constant dense<0xFF800000> : vector<2x1xf32>
    %30 = vector.multi_reduction <maximumf>, %29, %cst_17 [2] : vector<2x1x256xf32> to vector<2x1xf32>
    %31 = vector.shape_cast %30 : vector<2x1xf32> to vector<2x1x1xf32>
    %32 = vector.broadcast %31 : vector<2x1x1xf32> to vector<2x1x256xf32>
    %33 = arith.subf %29, %32 : vector<2x1x256xf32>
    %34 = math.exp %33 : vector<2x1x256xf32>
    %cst_18 = arith.constant dense<0.000000e+00> : vector<2x1xf32>
    %35 = vector.multi_reduction <add>, %34, %cst_18 [2] : vector<2x1x256xf32> to vector<2x1xf32>
    %36 = vector.shape_cast %35 : vector<2x1xf32> to vector<2x1x1xf32>
    %37 = tpu.reciprocal %36 {approx = true} : vector<2x1x1xf32> -> vector<2x1x1xf32>
    %38 = vector.broadcast %37 : vector<2x1x1xf32> to vector<2x1x256xf32>
    %39 = arith.mulf %34, %38 : vector<2x1x256xf32>
    %40 = vector.shape_cast %39 : vector<2x1x256xf32> to vector<2x256xf32>
    %c0_19 = arith.constant 0 : index
    %c0_20 = arith.constant 0 : index
    %41 = vector.load %arg6[%c0_19, %c0_20] : memref<2x256xf32, #tpu.memory_space<vmem>>, vector<2x256xf32>
    tpu.vector_store %arg6[%c0_19, %c0_20], %40 {strides = array<i32>} : memref<2x256xf32, #tpu.memory_space<vmem>>, vector<2x256xf32>,
    return
  }
  func.func @transform_0(%arg0: i32) -> (i32, i32) {
    %c0_i32 = arith.constant 0 : i32
    %c0_i32_0 = arith.constant 0 : i32
    return %c0_i32, %arg0 : i32, i32
  }
  func.func @transform_1(%arg0: i32) -> (i32, i32) {
    %c0_i32 = arith.constant 0 : i32
    %c0_i32_0 = arith.constant 0 : i32
    %c0_i32_1 = arith.constant 0 : i32
    return %c0_i32, %c0_i32_0 : i32, i32
  }
  func.func @transform_2(%arg0: i32) -> (i32, i32) {
    %c0_i32 = arith.constant 0 : i32
    %c0_i32_0 = arith.constant 0 : i32
    %c0_i32_1 = arith.constant 0 : i32
    return %c0_i32, %c0_i32_0 : i32, i32
  }
  func.func @transform_3(%arg0: i32) -> (i32, i32) {
    %c0_i32 = arith.constant 0 : i32
    %c0_i32_0 = arith.constant 0 : i32
    %c0_i32_1 = arith.constant 0 : i32
    return %c0_i32, %c0_i32_0 : i32, i32
  }
  func.func @transform_4(%arg0: i32) -> (i32, i32) {
    %c0_i32 = arith.constant 0 : i32
    %c0_i32_0 = arith.constant 0 : i32
    %c0_i32_1 = arith.constant 0 : i32
    return %c0_i32, %c0_i32_0 : i32, i32
  }
  func.func @transform_5(%arg0: i32) -> (i32, i32) {
    %c0_i32 = arith.constant 0 : i32
    %c0_i32_0 = arith.constant 0 : i32
    return %c0_i32, %arg0 : i32, i32
  }
}

</mosaic_0001>

<bundles_post_ra>
// kernel: tpu_custom_call.1
= control target key start
LH: loop header
LB: loop body
LE: loop exit
PB: predicated region body
PF: predicated region fallthrough
CT: control target
= control target key end

     0   :  { %10 = vsyncpa [#allocation3], 0  ;;  %s2450_s0 = inlined_call_operand.vmem [shape: f32[4,512], index: 0, kind: input, shape index: {}]   ;;  %s2451_s1 = inlined_call_operand.vmem [shape: f32[32,4], index: 1, kind: input, shape index: {}]   ;;  %s2452_s2 = inlined_call_operand.vmem [shape: f32[16,32], index: 2, kind: input, shape index: {}]   ;;  %s2453_s3 = inlined_call_operand.vmem [shape: f32[2,16], index: 3, kind: input, shape index: {}]   ;;  %s2454_s4 = inlined_call_operand.vmem [shape: f32[16,2], index: 4, kind: input, shape index: {}]   ;;  %s2455_s5 = inlined_call_operand.hbm [shape: f32[2,512], index: 5, kind: output, shape index: {}]  }
   0x1   :  { %12 = vsyncpa [#allocation3 + $0x1], 0  ;;  %s1998_s18 = smov 0   ;;  %s2000_s19 = smov 0  }
   0x2   :  { %s2002_s20 = smov 0   ;;  %s2004_s21 = smov 0  }
   0x3 LB: > { %s2019_s22 = sadd.s32 4294967295, %s1961_s21   ;;  %s1807_s23 = sadd.s32 4294967294, %s1961_s21   ;;  %s1961_s21 = sphi %s2004_s21, %s2461_s21   ;;  %s1957_s20 = sphi %s2002_s20, %s2460_s20   ;;  %s1953_s19 = sphi %s2000_s19, %s2459_s19   ;;  %s1949_s18 = sphi %s1998_s18, %s2458_s18  }
   0x4   : > { %s2023_s24 = sadd.s32 1, %s1961_s21   ;;  %s135_s25 = sadd.s32 1, %s1957_s20 }
   0x5   : > { %s132_s26 = ssub.s32 %s1961_s21, %s2023_s24  ;;  %p145_p0 = scmp.ne.s32.totalorder %s1957_s20, %s1953_s19 }
   0x6   : > { %p133_p1 = scmp.eq.s32.totalorder %s132_s26, 0  ;;  %p146_p2 = scmp.eq.s32.totalorder %s2019_s22, 1 }
   0x7   : > { %p151_p3 = scmp.ne.s32.totalorder %s1953_s19, %s1949_s18  ;;  %p152_p4 = scmp.eq.s32.totalorder %s1807_s23, 1 }
   0x8   : > { %s2034_s27 = scalar_select %p133_p1, %s1957_s20, %s135_s25  }
   0x9   : > { %p2036_p5 = por %p146_p2, %p145_p0  ;;  %p2040_p6 = por %p152_p4, %p151_p3 }
   0xa   : > { %p1810_p7 = scmp.ge.s32.totalorder %s1961_s21, 1  ;;  %p191_p8 = scmp.lt.s32.totalorder %s1961_s21, 3 }
   0xc   : > { %p192_p9 = pnand %p1810_p7, %p191_p8 }
   0xd   : > { %s1812_s30 = sshll.u32 (!%p192_p9), %s2019_s22, 1  ;;  %s1966_s8 = smov (!%p192_p9), 127  }
   0xe   : > { %195 = sbr.rel (%p192_p9) target bundleno = 1384 (0x568), region = 40  ;;  %p220_p10 = scmp.lt.s32.totalorder (!%p192_p9), %s1812_s30, 3 }
   0xf   : > { %s1829_s15 = sshll.u32 (!%p192_p9), %s2019_s22, 6  ;;  %s1967_s7 = smov (!%p192_p9), [#allocation2]  }
  0x10   : > { %s1746_s26 = scalar_lea.hbm (!%p192_p9), %s2455_s5, %s1829_s15 }
  0x13   : > { %v1963_v0 = vmov 0.0   ;;  %v2051_v1 = vld [vmem:[%s2454_s4 + $0x8] sm:$0xff]  ;;  %v1964_v2 = vmov 0   ;;  %s2463_s30 = smov (!%p220_p10, %s1812_s30), 3  ;;  %v2057_v3 = vld [vmem:[%s2454_s4] sm:$0xff]  ;;  %vm246_vm0 = vcmask 1043456   ;;  %v369_v19 = vlaneseq }
  0x14   : > { %315 = vmatprep.mubr.f32.mxu0 %v1963_v0  ;;  %1890 = vset.pattern.permute.xlu0 %v1964_v2  ;;  %s1813_s10 = sshll.u32 %s2463_s30, 2  ;;  %v227_v6 = vld [vmem:[%s2451_s1] sm:$0xff]  ;;  %vm233_vm1 = vcmask 31744   ;;  %v228_v7 = vld [vmem:[%s2451_s1 + $0x8] sm:$0xff]  ;;  %v229_v8 = vld [vmem:[%s2451_s1 + $0x10] sm:$0xff]  ;;  %vm624_vm2 = vcmask 1040384  }
  0x15   : > { %1891 = vset.pattern.permute.xlu1 %v1964_v2  ;;  %349 = vperm.xlu0 %1890, %v2051_v1   ;;  %s223_s13 = scalar_lea.vmem %s2450_s0, %s1813_s10  ;;  %v230_v9 = vld [vmem:[%s2451_s1 + $0x18] sm:$0xff]  ;;  %v1965_v17 = vmov 1966171168   ;;  %v370_v27 = vshrl.u32 %v369_v19, 7  ;;  %vm908_vm3 = vcmask 261120   ;;  %vm818_vm4 = vcmask 1041409  }
  0x16   : > { %v226_v4 = vld [vmem:[%s223_s13] sm:$0xff]  ;;  %v367_v18 = vunpack.c.l.s4 %v1965_v17  ;;  %vm821_vm5 = vcmask 1042434   ;;  %vm824_vm6 = vcmask 1043459   ;;  %vm827_vm7 = vcmask 1044484   ;;  %s216_s13 = sand.u32 1, %s1953_s19  }
  0x17   : > { %v232_v5 = vcombine.high %v226_v4, %v226_v4  ;;  %v2098_v39 = vsub.s32 0, %v370_v27  ;;  %v2100_v40 = vsub.s32 1, %v370_v27  ;;  %vm830_vm8 = vcmask 1045509   ;;  %s1811_s14 = sshll.u32 %s216_s13, 2  ;;  %s1734_s30 = scalar_lea.sflag [#allocation3], %s216_s13 }
  0x18   : > { %v368_v26 = vunpack.c.0.s8 %v367_v18  ;;  %vm833_vm9 = vcmask 1046534   ;;  %vm836_vm10 = vcmask 1047559   ;;  %vm1523_vm11 = vcmask 130048   ;;  %s218_s16 = scalar_lea.vmem [#allocation2], %s1811_s14 }
  0x19   : > { %344 = vperm.xlu0 %1890, %v2057_v3   ;;  %1814 = vmatprep.subr.msk.mxu0 %vm246_vm0, %v232_v5  ;;  %s1748_s17 = sshll.u32 %s218_s16, 4  ;;  %s1749_s17 = int_to_ptr.vmem [resolvable:$true] %s1748_s17 }
  0x1a   : > { %1815 = vmatpush1.msk.msra.mxu0 %vm246_vm0, %v226_v4  ;;  %v2094_v33 = vsub.s32 %v368_v26, %v370_v27  ;;  %s1901_s6 = scalar_lea.vmem %s1749_s17, 64 }
  0x1b   : > { %1816 = vmatmul.mubr.msk.f32.vlgmr.msra.gmra.mxu0 %vm233_vm1, %v227_v6  ;;  %p1902_p11 = scmp.ne.s32.totalorder %s1749_s17, %s1901_s6 }
  0x1c   : > { %321 = vmatprep.mubr.f32.mxu0 %v1963_v0 }
  0x1d   : > { %p1903_p12 = pnand %p1902_p11, %p2036_p5 }
  0x1f   : > { %1817 = vmatmul.mubr.msk.f32.gmra.mxu0 %vm233_vm1, %v228_v7  ;;  %p1904_p13 = pneg %p1903_p12 }
  0x20   : > { %327 = vmatprep.mubr.f32.mxu0 %v1963_v0 }
  0x23   : > { %1818 = vmatmul.mubr.msk.f32.gmra.mxu0 %vm233_vm1, %v229_v8 }
  0x24   : > { %333 = vmatprep.mubr.f32.mxu0 %v1963_v0 }
  0x27   : > { %1819 = vmatmul.mubr.msk.f32.gmra.mxu0 %vm233_vm1, %v230_v9 }
  0x90   : > { %v350_v11 = vpop.permute.xlu0 %349 }
  0x94   : > { %v345_v22 = vpop.permute.xlu0 %344 }
  0xdb   : > { %v2078_v10 = vpop.f32.mrf.mxu0 }
  0xdd   : > { %v2080_v12 = vpop.f32.mrf.mxu0 }
  0xde   : > { %v994_v13 = vcombine.low %v2078_v10, %v2080_v12  ;;  %v995_v14 = vcombine.high %v2078_v10, %v2080_v12 }
  0xdf   : > { %v2086_v15 = vpop.f32.mrf.mxu0 }
  0xe1   : > { %v2088_v16 = vpop.f32.mrf.mxu0 }
  0xe2   : > { %v1044_v20 = vcombine.low %v2086_v15, %v2088_v16  ;;  %v1045_v21 = vcombine.high %v2086_v15, %v2088_v16 }
  0xe3   : > { %v329_v23 = vpop.f32.mrf.mxu0 }
  0xe4   : > { %v352_v24 = vadd.f32 %v345_v22, %v329_v23 }
  0xe5   : > { %v331_v25 = vpop.f32.mrf.mxu0 }
  0xe6   : > { %v353_v28 = vadd.f32 %v345_v22, %v331_v25  ;;  %v356_v30 = vmax.f32 %v352_v24, 0.0 }
  0xe7   : > { %v335_v29 = vpop.f32.mrf.mxu0 }
  0xe8   : > { %v357_v31 = vmax.f32 %v353_v28, 0.0  ;;  %v354_v41 = vadd.f32 %v350_v11, %v335_v29 }
  0xe9   : > { %v337_v32 = vpop.f32.mrf.mxu0 }
  0xea   : > { %v364_v34 = vcombine.low %v356_v30, %v357_v31  ;;  %v365_v35 = vcombine.high %v356_v30, %v357_v31  ;;  %v355_v36 = vadd.f32 %v350_v11, %v337_v32  ;;  %v358_v50 = vmax.f32 %v354_v41, 0.0 }
  0xec   : > { %v372_v37 = vrot.slane %v364_v34, %v2094_v33  ;;  %v379_v38 = vrot.slane %v365_v35, %v2094_v33  ;;  %v359_v45 = vmax.f32 %v355_v36, 0.0 }
  0xee   : > { %v380_v42 = vcombine.high %v372_v37, %v372_v37  ;;  %v388_v43 = vrot.slane %v372_v37, %v2094_v33  ;;  %v395_v44 = vrot.slane %v379_v38, %v2094_v33  ;;  %v381_v57 = vcombine.high %v379_v38, %v379_v38 }
  0xef   : > { %v414_v58 = vcombine.low %v358_v50, %v359_v45  ;;  %v415_v7 = vcombine.high %v358_v50, %v359_v45 }
  0xf0   : > { %v499_v46 = vrot.slane %v395_v44, %v2098_v39  ;;  %v503_v47 = vrot.slane %v395_v44, %v2100_v40  ;;  %v467_v48 = vrot.slane %v388_v43, %v2098_v39  ;;  %v471_v49 = vrot.slane %v388_v43, %v2100_v40 }
  0xf1   : > { %v410_v51 = vcombine.high %v388_v43, %v388_v43  ;;  %v402_v52 = vrot.slane %v380_v42, %v2094_v33  ;;  %v422_v8 = vrot.slane %v414_v58, %v2094_v33  ;;  %v409_v11 = vrot.slane %v381_v57, %v2094_v33 }
  0xf2   : > { %v741_v53 = vsel %vm624_vm2, %v499_v46, -inf  ;;  %v742_v54 = vsel %vm624_vm2, %v503_v47, -inf  ;;  %v721_v55 = vsel %vm624_vm2, %v467_v48, -inf  ;;  %v722_v56 = vsel %vm624_vm2, %v471_v49, -inf }
  0xf3   : > { %v743_v59 = vmax.f32 %v741_v53, %v742_v54  ;;  %v723_v60 = vmax.f32 %v721_v55, %v722_v56  ;;  %v645_v61 = vsel %vm624_vm2, %v499_v46, 0.0  ;;  %v646_v62 = vsel %vm624_vm2, %v503_v47, 0.0 }
  0xf4   : > { %v625_v63 = vsel %vm624_vm2, %v467_v48, 0.0  ;;  %v626_v2 = vsel %vm624_vm2, %v471_v49, 0.0  ;;  %v483_v4 = vrot.slane %v410_v51, %v2098_v39  ;;  %v487_v5 = vrot.slane %v410_v51, %v2100_v40 }
  0xf5   : > { %744 = vmax.xlane.f32.xlu0 %v743_v59  ;;  %724 = vmax.xlane.f32.xlu1 %v723_v60  ;;  %v475_v6 = vrot.slane %v402_v52, %v2098_v39  ;;  %v479_v9 = vrot.slane %v402_v52, %v2100_v40  ;;  %v647_v17 = vadd.f32 %v646_v62, %v645_v61 }
  0xf6   : > { %v627_v18 = vadd.f32 %v626_v2, %v625_v63  ;;  %v635_v19 = vsel %vm624_vm2, %v483_v4, 0.0  ;;  %v636_v22 = vsel %vm624_vm2, %v487_v5, 0.0  ;;  %v507_v25 = vrot.slane %v409_v11, %v2098_v39 }
  0xf7   : > { %v726_v23 = vsel %vm624_vm2, %v475_v6, -inf  ;;  %v727_v24 = vsel %vm624_vm2, %v479_v9, -inf  ;;  %v511_v26 = vrot.slane %v409_v11, %v2100_v40  ;;  %v412_v27 = vcombine.high %v402_v52, %v402_v52 }
  0xf8   : > { %v429_v28 = vrot.slane %v415_v7, %v2094_v33  ;;  %v430_v29 = vcombine.high %v422_v8, %v422_v8  ;;  %v731_v30 = vsel %vm624_vm2, %v483_v4, -inf  ;;  %v637_v31 = vadd.f32 %v636_v22, %v635_v19 }
  0xf9   : > { %648 = vadd.xlane.f32.xlu1 %v647_v17  ;;  %628 = vadd.xlane.f32.xlu0 %v627_v18  ;;  %v728_v32 = vmax.f32 %v726_v23, %v727_v24  ;;  %v650_v34 = vsel %vm624_vm2, %v507_v25, 0.0  ;;  %v732_v35 = vsel %vm624_vm2, %v487_v5, -inf  ;;  %v651_v36 = vsel %vm624_vm2, %v511_v26, 0.0 }
  0xfa   : > { %v2135_v37 = vrot.slane %v412_v27, %v2098_v39  ;;  %v2138_v38 = vrot.slane %v412_v27, %v2100_v40  ;;  %v413_v41 = vcombine.high %v409_v11, %v409_v11  ;;  %v431_v42 = vcombine.high %v429_v28, %v429_v28 }
  0xfb   : > { %v733_v43 = vmax.f32 %v731_v30, %v732_v35  ;;  %v630_v45 = vsel %vm624_vm2, %v475_v6, 0.0  ;;  %v652_v46 = vadd.f32 %v651_v36, %v650_v34  ;;  %v631_v47 = vsel %vm624_vm2, %v479_v9, 0.0 }
  0xfc   : > { %v411_v48 = vcombine.high %v395_v44, %v395_v44  ;;  %v452_v49 = vrot.slane %v430_v29, %v2094_v33  ;;  %v736_v50 = vsel %vm624_vm2, %v2135_v37, -inf  ;;  %v737_v51 = vsel %vm624_vm2, %v2138_v38, -inf }
  0xfd   : > { %638 = vadd.xlane.f32.xlu0 %v637_v31  ;;  %729 = vmax.xlane.f32.xlu1 %v728_v32  ;;  %v2148_v52 = vrot.slane %v413_v41, %v2098_v39  ;;  %v2151_v53 = vrot.slane %v413_v41, %v2100_v40  ;;  %v2154_v54 = vrot.slane %v422_v8, %v2094_v33  ;;  %v746_v56 = vsel %vm624_vm2, %v507_v25, -inf }
  0xfe   : > { %v445_v44 = vrot.slane %v429_v28, %v2094_v33  ;;  %v632_v55 = vadd.f32 %v631_v47, %v630_v45  ;;  %v747_v57 = vsel %vm624_vm2, %v511_v26, -inf  ;;  %v738_v58 = vmax.f32 %v736_v50, %v737_v51 }
  0xff   : > { %v2160_v59 = vrot.slane %v411_v48, %v2098_v39  ;;  %v2163_v60 = vrot.slane %v411_v48, %v2100_v40  ;;  %v2166_v61 = vrot.slane %v452_v49, %v2098_v39  ;;  %v756_v62 = vsel %vm624_vm2, %v2148_v52, -inf }
 0x100   : > { %v757_v63 = vsel %vm624_vm2, %v2151_v53, -inf  ;;  %v2173_v2 = vrot.slane %v452_v49, %v2100_v40  ;;  %v459_v4 = vrot.slane %v431_v42, %v2094_v33  ;;  %v748_v5 = vmax.f32 %v746_v56, %v747_v57 }
 0x101   : > { %653 = vadd.xlane.f32.xlu0 %v652_v46  ;;  %734 = vmax.xlane.f32.xlu1 %v733_v43  ;;  %v531_v6 = vrot.slane %v2154_v54, %v2098_v39  ;;  %v535_v7 = vrot.slane %v2154_v54, %v2100_v40  ;;  %v758_v8 = vmax.f32 %v756_v62, %v757_v63  ;;  %v751_v9 = vsel %vm624_vm2, %v2160_v59, -inf }
 0x102   : > { %v752_v11 = vsel %vm624_vm2, %v2163_v60, -inf  ;;  %v461_v17 = vcombine.high %v445_v44, %v445_v44  ;;  %v670_v18 = vsel %vm624_vm2, %v2166_v61, 0.0  ;;  %v671_v19 = vsel %vm624_vm2, %v2173_v2, 0.0 }
 0x103   : > { %v2189_v22 = vrot.slane %v459_v4, %v2098_v39  ;;  %v2192_v23 = vrot.slane %v459_v4, %v2100_v40  ;;  %v753_v24 = vmax.f32 %v751_v9, %v752_v11  ;;  %v761_v25 = vsel %vm624_vm2, %v531_v6, -inf }
 0x104   : > { %v762_v26 = vsel %vm624_vm2, %v535_v7, -inf  ;;  %v672_v27 = vadd.f32 %v671_v19, %v670_v18  ;;  %v563_v28 = vrot.slane %v445_v44, %v2098_v39  ;;  %v567_v29 = vrot.slane %v445_v44, %v2100_v40 }
 0x105   : > { %633 = vadd.xlane.f32.xlu1 %v632_v55  ;;  %739 = vmax.xlane.f32.xlu0 %v738_v58  ;;  %v2199_v30 = vrot.slane %v461_v17, %v2098_v39  ;;  %v690_v31 = vsel %vm624_vm2, %v2189_v22, 0.0  ;;  %v691_v32 = vsel %vm624_vm2, %v2192_v23, 0.0  ;;  %v2206_v34 = vrot.slane %v461_v17, %v2100_v40 }
 0x106   : > { %v462_v35 = vcombine.high %v452_v49, %v452_v49  ;;  %v763_v36 = vmax.f32 %v761_v25, %v762_v26  ;;  %v692_v41 = vadd.f32 %v691_v32, %v690_v31  ;;  %v781_v42 = vsel %vm624_vm2, %v563_v28, -inf }
 0x107   : > { %v782_v43 = vsel %vm624_vm2, %v567_v29, -inf  ;;  %v695_v45 = vsel %vm624_vm2, %v2199_v30, 0.0  ;;  %v696_v46 = vsel %vm624_vm2, %v2206_v34, 0.0  ;;  %v463_v50 = vcombine.high %v459_v4, %v459_v4 }
 0x108   : > { %v555_v47 = vrot.slane %v462_v35, %v2098_v39  ;;  %v559_v48 = vrot.slane %v462_v35, %v2100_v40  ;;  %v783_v49 = vmax.f32 %v781_v42, %v782_v43  ;;  %v697_v51 = vadd.f32 %v696_v46, %v695_v45 }
 0x109   : > { %749 = vmax.xlane.f32.xlu1 %v748_v5  ;;  %759 = vmax.xlane.f32.xlu0 %v758_v8  ;;  %v665_v44 = vsel %vm624_vm2, %v531_v6, 0.0  ;;  %v666_v55 = vsel %vm624_vm2, %v535_v7, 0.0  ;;  %v587_v58 = vrot.slane %v463_v50, %v2098_v39  ;;  %v591_v62 = vrot.slane %v463_v50, %v2100_v40 }
 0x10a   : > { %v680_v56 = vsel %vm624_vm2, %v555_v47, 0.0  ;;  %v681_v57 = vsel %vm624_vm2, %v559_v48, 0.0  ;;  %v667_v63 = vadd.f32 %v666_v55, %v665_v44  ;;  %v685_v5 = vsel %vm624_vm2, %v563_v28, 0.0 }
 0x10b   : > { %v682_v4 = vadd.f32 %v681_v57, %v680_v56  ;;  %v686_v8 = vsel %vm624_vm2, %v567_v29, 0.0  ;;  %v796_v6 = vsel %vm624_vm2, %v587_v58, -inf  ;;  %v797_v7 = vsel %vm624_vm2, %v591_v62, -inf }
 0x10c   : > { %v687_v9 = vadd.f32 %v686_v8, %v685_v5  ;;  %v798_v11 = vmax.f32 %v796_v6, %v797_v7  ;;  %v640_v17 = vsel %vm624_vm2, %v2135_v37, 0.0  ;;  %v641_v18 = vsel %vm624_vm2, %v2138_v38, 0.0 }
 0x10d   : > { %754 = vmax.xlane.f32.xlu1 %v753_v24  ;;  %673 = vadd.xlane.f32.xlu0 %v672_v27  ;;  %v660_v19 = vsel %vm624_vm2, %v2148_v52, 0.0  ;;  %v661_v24 = vsel %vm624_vm2, %v2151_v53, 0.0  ;;  %v460_v25 = vcombine.high %v2154_v54, %v2154_v54  ;;  %v642_v26 = vadd.f32 %v641_v18, %v640_v17 }
 0x10e   : > { %v662_v27 = vadd.f32 %v661_v24, %v660_v19  ;;  %v766_v28 = vsel %vm624_vm2, %v2166_v61, -inf  ;;  %v767_v37 = vsel %vm624_vm2, %v2173_v2, -inf  ;;  %v786_v2 = vsel %vm624_vm2, %v2189_v22, -inf }
 0x10f   : > { %v547_v38 = vrot.slane %v460_v25, %v2098_v39  ;;  %v551_v52 = vrot.slane %v460_v25, %v2100_v40  ;;  %v768_v53 = vmax.f32 %v766_v28, %v767_v37  ;;  %v791_v42 = vsel %vm624_vm2, %v2199_v30, -inf }
 0x110   : > { %v792_v43 = vsel %vm624_vm2, %v2206_v34, -inf  ;;  %v776_v46 = vsel %vm624_vm2, %v555_v47, -inf  ;;  %v777_v50 = vsel %vm624_vm2, %v559_v48, -inf  ;;  %v700_v22 = vsel %vm624_vm2, %v587_v58, 0.0  ;;  %v900_v47 = vld [vmem:[%s2452_s2] sm:$0xff] }
 0x111   : > { %764 = vmax.xlane.f32.xlu1 %v763_v36  ;;  %693 = vadd.xlane.f32.xlu0 %v692_v41  ;;  %v771_v29 = vsel %vm624_vm2, %v547_v38, -inf  ;;  %v772_v54 = vsel %vm624_vm2, %v551_v52, -inf  ;;  %v675_v32 = vsel %vm624_vm2, %v547_v38, 0.0  ;;  %v676_v61 = vsel %vm624_vm2, %v551_v52, 0.0 }
 0x112   : > { %v773_v31 = vmax.f32 %v771_v29, %v772_v54  ;;  %v677_v35 = vadd.f32 %v676_v61, %v675_v32  ;;  %v787_v36 = vsel %vm624_vm2, %v2192_v23, -inf  ;;  %v793_v45 = vmax.f32 %v791_v42, %v792_v43  ;;  %1844 = vmatprep.mubr.msk.f32.mxu1 %vm908_vm3, %v900_v47 }
 0x113   : > { %v788_v41 = vmax.f32 %v786_v2, %v787_v36  ;;  %v701_v23 = vsel %vm624_vm2, %v591_v62, 0.0  ;;  %v655_v30 = vsel %vm624_vm2, %v2160_v59, 0.0  ;;  %v656_v34 = vsel %vm624_vm2, %v2163_v60, 0.0 }
 0x114   : > { %v657_v44 = vadd.f32 %v656_v34, %v655_v30 }
 0x115   : > { %784 = vmax.xlane.f32.xlu1 %v783_v49  ;;  %698 = vadd.xlane.f32.xlu0 %v697_v51  ;;  %v778_v49 = vmax.f32 %v776_v46, %v777_v50  ;;  %v702_v51 = vadd.f32 %v701_v23, %v700_v22 }
 0x119   : > { %668 = vadd.xlane.f32.xlu1 %v667_v63  ;;  %683 = vadd.xlane.f32.xlu0 %v682_v4 }
 0x11d   : > { %688 = vadd.xlane.f32.xlu1 %v687_v9  ;;  %799 = vmax.xlane.f32.xlu0 %v798_v11 }
 0x121   : > { %643 = vadd.xlane.f32.xlu1 %v642_v26  ;;  %663 = vadd.xlane.f32.xlu0 %v662_v27 }
 0x125   : > { %769 = vmax.xlane.f32.xlu1 %v768_v53 }
 0x129   : > { %774 = vmax.xlane.f32.xlu1 %v773_v31 }
 0x12d   : > { %678 = vadd.xlane.f32.xlu1 %v677_v35 }
 0x131   : > { %789 = vmax.xlane.f32.xlu1 %v788_v41 }
 0x135   : > { %794 = vmax.xlane.f32.xlu1 %v793_v45 }
 0x137   : > { %902 = vrot.lane.b32.xlu0 %v2057_v3, %s1966_s8 }
 0x139   : > { %779 = vmax.xlane.f32.xlu1 %v778_v49 }
 0x13d   : > { %703 = vadd.xlane.f32.xlu1 %v702_v51 }
 0x141   : > { %658 = vadd.xlane.f32.xlu1 %v657_v44 }
 0x152   : > { %904 = vrot.lane.b32.xlu1 %v2051_v1, %s1966_s8  ;;  %s1905_s8 = sshll.u32 %s1967_s7, 4  ;;  %s1906_s8 = int_to_ptr.vmem [resolvable:$false] %s1905_s8 }
 0x153   : > { %s1907_s22 = scalar_lea.vmem %s1906_s8, 128  ;;  %p1908_p0 = scmp.lt.s32.totalorder %s1749_s17, %s1906_s8 }
 0x154   : > { %p1909_p1 = scmp.lt.s32.totalorder %s1907_s22, %s1901_s6 }
 0x156   : > { %p1910_p2 = por %p1909_p1, %p1908_p0 }
 0x158   : > { %p1911_p3 = pnand %p1910_p2, %p1904_p13 }
 0x17e   : > { %v725_v48 = vpop.xlane.xlu1 %724  ;;  %v2268_v55 = vpop.xlane.xlu0 %744 }
 0x17f   : > { %v876_v41 = vrot.slane %v2268_v55, 4 }
 0x182   : > { %v649_v59 = vpop.xlane.xlu1 %648  ;;  %v629_v56 = vpop.xlane.xlu0 %628 }
 0x183   : > { %v2280_v61 = vmul.f32 0.00390625, %v649_v59  ;;  %v705_v50 = vmul.f32 0.00390625, %v629_v56 }
 0x185   : > { %v826_v47 = vrot.slane %v2280_v61, 4 }
 0x186   : > { %v730_v60 = vpop.xlane.xlu1 %729  ;;  %v639_v62 = vpop.xlane.xlu0 %638 }
 0x187   : > { %v870_v28 = vrot.slane %v730_v60, 7  ;;  %v707_v42 = vmul.f32 0.00390625, %v639_v62 }
 0x189   : > { %v871_v35 = vsel %vm818_vm4, %v870_v28, %v725_v48  ;;  %v820_v60 = vrot.slane %v707_v42, 6 }
 0x18a   : > { %v735_v57 = vpop.xlane.xlu1 %734  ;;  %v2272_v4 = vpop.xlane.xlu0 %653 }
 0x18b   : > { %v872_v38 = vrot.slane %v735_v57, 6  ;;  %v710_v61 = vmul.f32 0.00390625, %v2272_v4 }
 0x18d   : > { %v873_v43 = vsel %vm821_vm5, %v872_v38, %v871_v35 }
 0x18e   : > { %v634_v58 = vpop.xlane.xlu1 %633  ;;  %v740_v6 = vpop.xlane.xlu0 %739 }
 0x18f   : > { %v706_v52 = vmul.f32 0.00390625, %v634_v58  ;;  %v874_v54 = vrot.slane %v740_v6, 5 }
 0x191   : > { %v817_v45 = vrot.slane %v706_v52, 7  ;;  %v875_v49 = vsel %vm824_vm6, %v874_v54, %v873_v43 }
 0x192   : > { %v2270_v63 = vpop.xlane.xlu1 %749  ;;  %v2278_v3 = vpop.xlane.xlu0 %759  ;;  %v877_v57 = vsel %vm827_vm7, %v876_v41, %v875_v49 }
 0x193   : > { %v878_v48 = vrot.slane %v2270_v63, 3  ;;  %v819_v56 = vsel %vm818_vm4, %v817_v45, %v705_v50 }
 0x196   : > { %v2274_v5 = vpop.xlane.xlu1 %754  ;;  %v674_v11 = vpop.xlane.xlu0 %673 }
 0x197   : > { %v714_v37 = vmul.f32 0.00390625, %v674_v11  ;;  %v880_v58 = vrot.slane %v2274_v5, 2 }
 0x199   : > { %v838_v2 = vrot.slane %v714_v37, 7 }
 0x19a   : > { %v765_v8 = vpop.xlane.xlu1 %764  ;;  %v694_v18 = vpop.xlane.xlu0 %693 }
 0x19b   : > { %v718_v6 = vmul.f32 0.00390625, %v694_v18 }
 0x19e   : > { %v2276_v1 = vpop.xlane.xlu1 %784  ;;  %v699_v25 = vpop.xlane.xlu0 %698 }
 0x19f   : > { %v719_v37 = vmul.f32 0.00390625, %v699_v25 }
 0x1a1   : > { %v848_v43 = vrot.slane %v719_v37, 2 }
 0x1a2   : > { %v669_v7 = vpop.xlane.xlu1 %668  ;;  %v684_v53 = vpop.xlane.xlu0 %683 }
 0x1a3   : > { %v713_v31 = vmul.f32 0.00390625, %v669_v7  ;;  %v716_v36 = vmul.f32 0.00390625, %v684_v53  ;;  %v846_v53 = vrot.slane %v718_v6, 3 }
 0x1a5   : > { %v839_v22 = vsel %vm818_vm4, %v838_v2, %v713_v31  ;;  %v842_v59 = vrot.slane %v716_v36, 5  ;;  %v882_v2 = vrot.slane %v2278_v3, 1 }
 0x1a6   : > { %v689_v9 = vpop.xlane.xlu1 %688  ;;  %v800_v55 = vpop.xlane.xlu0 %799 }
 0x1a7   : > { %v717_v51 = vmul.f32 0.00390625, %v689_v9 }
 0x1a9   : > { %v844_v63 = vrot.slane %v717_v51, 4 }
 0x1aa   : > { %v644_v17 = vpop.xlane.xlu1 %643  ;;  %v664_v54 = vpop.xlane.xlu0 %663 }
 0x1ab   : > { %v708_v30 = vmul.f32 0.00390625, %v644_v17  ;;  %v890_v17 = vrot.slane %v2276_v1, 4  ;;  %v896_v1 = vrot.slane %v800_v55, 1  ;;  %v712_v45 = vmul.f32 0.00390625, %v664_v54 }
 0x1ae   : > { %v770_v19 = vpop.xlane.xlu1 %769 }
 0x1af   : > { %v884_v23 = vrot.slane %v770_v19, 7  ;;  %v823_v19 = vrot.slane %v708_v30, 5  ;;  %v835_v30 = vrot.slane %v712_v45, 1  ;;  %v1059_v45 = vrot.slane %v1045_v21, %v2094_v33 }
 0x1b1   : > { %v885_v7 = vsel %vm818_vm4, %v884_v23, %v765_v8 }
 0x1b2   : > { %v775_v24 = vpop.xlane.xlu1 %774 }
 0x1b3   : > { %v886_v34 = vrot.slane %v775_v24, 6 }
 0x1b5   : > { %v887_v24 = vsel %vm821_vm5, %v886_v34, %v885_v7 }
 0x1b6   : > { %v679_v26 = vpop.xlane.xlu1 %678 }
 0x1b7   : > { %v715_v27 = vmul.f32 0.00390625, %v679_v26  ;;  %v879_v26 = vsel %vm830_vm8, %v878_v48, %v877_v57  ;;  %v901_v48 = vld [vmem:[%s2452_s2 + $0x8] sm:$0xff] }
 0x1b8   : > { %v881_v25 = vsel %vm833_vm9, %v880_v58, %v879_v26 }
 0x1b9   : > { %v840_v32 = vrot.slane %v715_v27, 6  ;;  %v822_v27 = vsel %vm821_vm5, %v820_v60, %v819_v56  ;;  %v883_v49 = vsel %vm836_vm10, %v882_v2, %v881_v25 }
 0x1ba   : > { %v790_v29 = vpop.xlane.xlu1 %789  ;;  %v825_v35 = vsel %vm824_vm6, %v823_v19, %v822_v27 }
 0x1bb   : > { %v841_v44 = vsel %vm821_vm5, %v840_v32, %v839_v22  ;;  %v892_v28 = vrot.slane %v790_v29, 3  ;;  %v828_v50 = vsel %vm827_vm7, %v826_v47, %v825_v35  ;;  %v829_v22 = vrot.slane %v710_v61, 3 }
 0x1bc   : > { %v843_v9 = vsel %vm824_vm6, %v842_v59, %v841_v44 }
 0x1bd   : > { %v845_v52 = vsel %vm827_vm7, %v844_v63, %v843_v9  ;;  %v831_v34 = vsel %vm830_vm8, %v829_v22, %v828_v50 }
 0x1be   : > { %v795_v46 = vpop.xlane.xlu1 %794  ;;  %v847_v42 = vsel %vm830_vm8, %v846_v53, %v845_v52 }
 0x1bf   : > { %v894_v18 = vrot.slane %v795_v46, 2  ;;  %v849_v23 = vsel %vm833_vm9, %v848_v43, %v847_v42 }
 0x1c2   : > { %v780_v62 = vpop.xlane.xlu1 %779 }
 0x1c3   : > { %v888_v11 = vrot.slane %v780_v62, 5  ;;  %v903_v62 = vpop.permute.xlu0 %902 }
 0x1c5   : > { %v889_v5 = vsel %vm824_vm6, %v888_v11, %v887_v24 }
 0x1c6   : > { %v704_v38 = vpop.xlane.xlu1 %703  ;;  %v891_v8 = vsel %vm827_vm7, %v890_v17, %v889_v5 }
 0x1c7   : > { %v720_v31 = vmul.f32 0.00390625, %v704_v38  ;;  %v893_v32 = vsel %vm830_vm8, %v892_v28, %v891_v8 }
 0x1c8   : > { %v895_v29 = vsel %vm833_vm9, %v894_v18, %v893_v32 }
 0x1c9   : > { %v850_v36 = vrot.slane %v720_v31, 1  ;;  %v897_v41 = vsel %vm836_vm10, %v896_v1, %v895_v29  ;;  %v1052_v29 = vrot.slane %v1044_v20, %v2094_v33 }
 0x1ca   : > { %v659_v46 = vpop.xlane.xlu1 %658  ;;  %1836 = vmatprep.subr.mxu1 %v897_v41 }
 0x1cb   : > { %v711_v4 = vmul.f32 0.00390625, %v659_v46  ;;  %1837 = vmatpush3.msra.mxu1 %v897_v41  ;;  %v851_v51 = vsel %vm836_vm10, %v850_v36, %v849_v23  ;;  %v1060_v2 = vcombine.high %v1052_v29, %v1052_v29  ;;  %v1068_v46 = vrot.slane %v1052_v29, %v2094_v33 }
 0x1cc   : > { %1838 = vmatprep.subr.mxu1 %v883_v49 }
 0x1cd   : > { %v832_v3 = vrot.slane %v711_v4, 2  ;;  %1839 = vmatpush3.msra.mxu1 %v883_v49  ;;  %v1082_v42 = vrot.slane %v1060_v2, %v2094_v33  ;;  %v1090_v16 = vcombine.high %v1068_v46, %v1068_v46 }
 0x1ce   : > { %1840 = vmatprep.subr.mxu1 %v851_v51  ;;  %v905_v59 = vpop.permute.xlu1 %904 }
 0x1cf   : > { %1841 = vmatpush3.msra.mxu1 %v851_v51  ;;  %v834_v44 = vsel %vm833_vm9, %v832_v3, %v831_v34  ;;  %v1092_v22 = vcombine.high %v1082_v42, %v1082_v42  ;;  %v1061_v3 = vcombine.high %v1059_v45, %v1059_v45  ;;  %v1002_v51 = vrot.slane %v994_v13, %v2094_v33 }
 0x1d0   : > { %v837_v47 = vsel %vm836_vm10, %v835_v30, %v834_v44 }
 0x1d1   : > { %1842 = vmatprep.subr.mxu1 %v837_v47 }
 0x1d2   : > { %1843 = vmatpush3.msra.mxu1 %v837_v47 }
 0x1d3   : > { %1845 = vmatmul.mubr.msk.f32.vlgmr.msra.gmra.mxu1 %vm908_vm3, %v901_v48 }
 0x1d4   : > { %1591 = vmatprep.mubr.f32.mxu1 %v1963_v0 }
 0x293   : > { %v1846_v55 = vpop.f32.mrf.mxu1 }
 0x294   : > { %v987_v60 = vadd.f32 %v1846_v55, %v905_v59  ;;  %v1075_v59 = vrot.slane %v1059_v45, %v2094_v33 }
 0x295   : > { %v981_v58 = vpop.f32.mrf.mxu1 }
 0x296   : > { %v1168_v56 = vrot.slane %v987_v60, %v2094_v33  ;;  %v1161_v57 = vcombine.high %v987_v60, %v987_v60  ;;  %v982_v11 = vadd.f32 %v981_v58, %v903_v62  ;;  %v1089_v60 = vrot.slane %v1061_v3, %v2094_v33 }
 0x298   : > { %v1176_v6 = vcombine.high %v1168_v56, %v1168_v56  ;;  %v1184_v7 = vrot.slane %v1168_v56, %v2094_v33  ;;  %v1175_v9 = vrot.slane %v1161_v57, %v2094_v33  ;;  %v1119_v0 = vrot.slane %v982_v11, %v2094_v33 }
 0x299   : > { %v1112_v37 = vcombine.high %v982_v11, %v982_v11  ;;  %v1010_v56 = vcombine.high %v1002_v51, %v1002_v51 }
 0x29a   : > { %1275 = vperm.xlu1 %1891, %v1184_v7   ;;  %v1206_v17 = vcombine.high %v1184_v7, %v1184_v7  ;;  %v1198_v63 = vrot.slane %v1176_v6, %v2094_v33  ;;  %v1191_v19 = vrot.slane %v1175_v9, %v2094_v33  ;;  %v1177_v26 = vcombine.high %v1175_v9, %v1175_v9 }
 0x29b   : > { %v1135_v27 = vrot.slane %v1119_v0, %v2094_v33  ;;  %v1127_v28 = vcombine.high %v1119_v0, %v1119_v0  ;;  %v1126_v8 = vrot.slane %v1112_v37, %v2094_v33  ;;  %v1009_v7 = vrot.slane %v995_v14, %v2094_v33 }
 0x29c   : > { %1291 = vperm.xlu0 %1890, %v1206_v17   ;;  %v1208_v24 = vcombine.high %v1198_v63, %v1198_v63  ;;  %v1205_v5 = vrot.slane %v1177_v26, %v2094_v33  ;;  %v1207_v18 = vcombine.high %v1191_v19, %v1191_v19  ;;  %v1091_v0 = vcombine.high %v1075_v59, %v1075_v59 }
 0x29d   : > { %v1149_v38 = vrot.slane %v1127_v28, %v2094_v33  ;;  %v1157_v52 = vcombine.high %v1135_v27, %v1135_v27  ;;  %v1142_v1 = vrot.slane %v1126_v8, %v2094_v33  ;;  %v1128_v31 = vcombine.high %v1126_v8, %v1126_v8 }
 0x29e   : > { %1283 = vperm.xlu1 %1891, %v1198_v63   ;;  %v1209_v53 = vcombine.high %v1205_v5, %v1205_v5  ;;  %v1018_v26 = vrot.slane %v1002_v51, %v2094_v33  ;;  %v1011_v8 = vcombine.high %v1009_v7, %v1009_v7 }
 0x29f   : > { %v1159_v54 = vcombine.high %v1149_v38, %v1149_v38  ;;  %v1158_v32 = vcombine.high %v1142_v1, %v1142_v1  ;;  %v1156_v61 = vrot.slane %v1128_v31, %v2094_v33 }
 0x2a0   : > { %1307 = vperm.xlu0 %1890, %v1191_v19  }
 0x2a1   : > { %v1160_v35 = vcombine.high %v1156_v61, %v1156_v61 }
 0x2a2   : > { %1299 = vperm.xlu1 %1891, %v1208_v24  }
 0x2a4   : > { %1211 = vperm.xlu0 %1890, %v1135_v27   ;;  %v1032_v27 = vrot.slane %v1010_v56, %v2094_v33 }
 0x2a6   : > { %1315 = vperm.xlu1 %1891, %v1205_v5  }
 0x2a8   : > { %1323 = vperm.xlu0 %1890, %v1207_v18   ;;  %v1093_v18 = vcombine.high %v1089_v60, %v1089_v60 }
 0x2aa   : > { %1219 = vperm.xlu1 %1891, %v1149_v38  }
 0x2ac   : > { %1227 = vperm.xlu0 %1890, %v1157_v52  }
 0x2ae   : > { %1331 = vperm.xlu1 %1891, %v1209_v53  }
 0x2b0   : > { %1243 = vperm.xlu0 %1890, %v1142_v1  }
 0x2b2   : > { %1235 = vperm.xlu1 %1891, %v1159_v54  }
 0x2b4   : > { %1259 = vperm.xlu0 %1890, %v1158_v32   ;;  %v1040_v32 = vcombine.high %v1018_v26, %v1018_v26 }
 0x2b6   : > { %1251 = vperm.xlu1 %1891, %v1156_v61   ;;  %v1042_v61 = vcombine.high %v1032_v27, %v1032_v27 }
 0x2ba   : > { %1267 = vperm.xlu1 %1891, %v1160_v35  }
 0x315   : > { %v1276_v25 = vpop.permute.xlu1 %1275 }
 0x316   : > { %v1281_v15 = vrot.slane %v1276_v25, %v2098_v39 }
 0x317   : > { %v1292_v36 = vpop.permute.xlu0 %1291 }
 0x318   : > { %v1297_v49 = vrot.slane %v1292_v36, %v2098_v39  ;;  %v1346_v57 = vadd.f32 %v1281_v15, %v1068_v46  ;;  %v1039_v46 = vrot.slane %v1011_v8, %v2094_v33 }
 0x319   : > { %v1284_v41 = vpop.permute.xlu1 %1283 }
 0x31a   : > { %v1289_v20 = vrot.slane %v1284_v41, %v2098_v39  ;;  %v1348_v44 = vadd.f32 %v1297_v49, %v1090_v16  ;;  %v1362_v19 = vmax.f32 %v1346_v57, 0.0 }
 0x31b   : > { %v1308_v43 = vpop.permute.xlu0 %1307 }
 0x31c   : > { %v1347_v47 = vadd.f32 %v1289_v20, %v1082_v42  ;;  %v1313_v55 = vrot.slane %v1308_v43, %v2098_v39  ;;  %v1364_v9 = vmax.f32 %v1348_v44, 0.0  ;;  %v1025_v43 = vrot.slane %v1009_v7, %v2094_v33 }
 0x31d   : > { %v1300_v50 = vpop.permute.xlu1 %1299 }
 0x31e   : > { %v1305_v4 = vrot.slane %v1300_v50, %v2098_v39  ;;  %v1363_v11 = vmax.f32 %v1347_v47, 0.0  ;;  %v1350_v63 = vadd.f32 %v1313_v55, %v1075_v59  ;;  %v1041_v44 = vcombine.high %v1025_v43, %v1025_v43 }
 0x31f   : > { %v1212_v23 = vpop.permute.xlu0 %1211  ;;  %v1043_v47 = vcombine.high %v1039_v46, %v1039_v46 }
 0x320   : > { %v1349_v21 = vadd.f32 %v1305_v4, %v1092_v22  ;;  %v1453_v10 = vcombine.low %v1362_v19, %v1363_v11  ;;  %v1366_v52 = vmax.f32 %v1350_v63, 0.0  ;;  %v1217_v31 = vrot.slane %v1212_v23, %v2098_v39 }
 0x321   : > { %v1316_v30 = vpop.permute.xlu1 %1315 }
 0x322   : > { %v1321_v34 = vrot.slane %v1316_v30, %v2098_v39  ;;  %v1365_v58 = vmax.f32 %v1349_v21, 0.0  ;;  %v1463_v41 = vrot.slane %v1453_v10, %v2094_v33  ;;  %v1338_v23 = vadd.f32 %v1217_v31, %v1018_v26 }
 0x323   : > { %v1324_v48 = vpop.permute.xlu0 %1323 }
 0x324   : > { %v1351_v62 = vadd.f32 %v1321_v34, %v1089_v60  ;;  %v1329_v6 = vrot.slane %v1324_v48, %v2098_v39  ;;  %v1454_v24 = vcombine.low %v1364_v9, %v1365_v58  ;;  %v1354_v57 = vmax.f32 %v1338_v23, 0.0 }
 0x325   : > { %v1220_v13 = vpop.permute.xlu1 %1219 }
 0x326   : > { %v1367_v5 = vmax.f32 %v1351_v62, 0.0  ;;  %v1352_v37 = vadd.f32 %v1329_v6, %v1091_v0  ;;  %v1225_v12 = vrot.slane %v1220_v13, %v2098_v39  ;;  %v1470_v54 = vrot.slane %v1454_v24, %v2094_v33 }
 0x327   : > { %v1228_v17 = vpop.permute.xlu0 %1227 }
 0x328   : > { %v1233_v53 = vrot.slane %v1228_v17, %v2098_v39  ;;  %v1455_v29 = vcombine.low %v1366_v52, %v1367_v5  ;;  %v1368_v25 = vmax.f32 %v1352_v37, 0.0  ;;  %v1339_v42 = vadd.f32 %v1225_v12, %v1032_v27 }
 0x329   : > { %v1332_v28 = vpop.permute.xlu1 %1331  ;;  %v1485_v22 = vcombine.low %v1463_v41, %v1470_v54  ;;  %v1486_v48 = vcombine.high %v1463_v41, %v1470_v54 }
 0x32a   : > { %v1337_v38 = vrot.slane %v1332_v28, %v2098_v39  ;;  %v1340_v50 = vadd.f32 %v1233_v53, %v1040_v32  ;;  %v1477_v15 = vrot.slane %v1455_v29, %v2094_v33  ;;  %v1355_v34 = vmax.f32 %v1339_v42, 0.0 }
 0x32b   : > { %v1244_v14 = vpop.permute.xlu0 %1243  ;;  %v1495_v6 = vrot.slane %v1485_v22, %v2094_v33  ;;  %v1502_v63 = vrot.slane %v1486_v48, %v2094_v33 }
 0x32c   : > { %v1353_v1 = vadd.f32 %v1337_v38, %v1093_v18  ;;  %v1249_v49 = vrot.slane %v1244_v14, %v2098_v39  ;;  %v1356_v59 = vmax.f32 %v1340_v50, 0.0  ;;  %v1387_v19 = vcombine.low %v1354_v57, %v1355_v34 }
 0x32d   : > { %v1236_v35 = vpop.permute.xlu1 %1235 }
 0x32e   : > { %v1369_v2 = vmax.f32 %v1353_v1, 0.0  ;;  %v1241_v36 = vrot.slane %v1236_v35, %v2098_v39  ;;  %v1342_v60 = vadd.f32 %v1249_v49, %v1025_v43  ;;  %v1397_v8 = vrot.slane %v1387_v19, %v2094_v33 }
 0x32f   : > { %v1260_v45 = vpop.permute.xlu0 %1259 }
 0x330   : > { %v1456_v4 = vcombine.low %v1368_v25, %v1369_v2  ;;  %v1341_v20 = vadd.f32 %v1241_v36, %v1042_v61  ;;  %v1265_v3 = vrot.slane %v1260_v45, %v2098_v39  ;;  %v1358_v24 = vmax.f32 %v1342_v60, 0.0  ;;  %v1370_v2 = vld [vmem:[%s2453_s3] sm:$0x3] }
 0x331   : > { %v1252_v51 = vpop.permute.xlu1 %1251 }
 0x332   : > { %v1484_v16 = vrot.slane %v1456_v4, %v2094_v33  ;;  %v1357_v21 = vmax.f32 %v1341_v20, 0.0  ;;  %v1257_v30 = vrot.slane %v1252_v51, %v2098_v39  ;;  %v1344_v58 = vadd.f32 %v1265_v3, %v1041_v44 }
 0x334   : > { %v1487_v55 = vcombine.low %v1477_v15, %v1484_v16  ;;  %v1343_v56 = vadd.f32 %v1257_v30, %v1039_v46  ;;  %v1488_v62 = vcombine.high %v1477_v15, %v1484_v16  ;;  %v1388_v7 = vcombine.low %v1356_v59, %v1357_v21 }
 0x335   : > { %v1268_v13 = vpop.permute.xlu1 %1267  ;;  %v1360_v37 = vmax.f32 %v1344_v58, 0.0 }
 0x336   : > { %v1359_v9 = vmax.f32 %v1343_v56, 0.0  ;;  %v1273_v11 = vrot.slane %v1268_v13, %v2098_v39  ;;  %v1509_v17 = vrot.slane %v1487_v55, %v2094_v33  ;;  %v1516_v0 = vrot.slane %v1488_v62, %v2094_v33 }
 0x337   : > { %v1404_v5 = vrot.slane %v1388_v7, %v2094_v33 }
 0x338   : > { %v1345_v26 = vadd.f32 %v1273_v11, %v1043_v47  ;;  %v1517_v27 = vcombine.low %v1495_v6, %v1509_v17  ;;  %v1518_v28 = vcombine.low %v1502_v63, %v1516_v0  ;;  %v1389_v18 = vcombine.low %v1358_v24, %v1359_v9 }
 0x339   : > { %v1419_v12 = vcombine.low %v1397_v8, %v1404_v5  ;;  %v1420_v53 = vcombine.high %v1397_v8, %v1404_v5 }
 0x33a   : > { %v1361_v38 = vmax.f32 %v1345_v26, 0.0  ;;  %1555 = vmatprep.subr.mxu1 %v1518_v28  ;;  %v1411_v14 = vrot.slane %v1389_v18, %v2094_v33 }
 0x33b   : > { %1556 = vmatpush1.msra.mxu1 %v1517_v27  ;;  %v1436_v31 = vrot.slane %v1420_v53, %v2094_v33  ;;  %v1429_v61 = vrot.slane %v1419_v12, %v2094_v33 }
 0x33c   : > { %v1390_v10 = vcombine.low %v1360_v37, %v1361_v38 }
 0x33e   : > { %v1418_v52 = vrot.slane %v1390_v10, %v2094_v33 }
 0x340   : > { %v1421_v1 = vcombine.low %v1411_v14, %v1418_v52  ;;  %v1422_v54 = vcombine.high %v1411_v14, %v1418_v52 }
 0x342   : > { %v1450_v32 = vrot.slane %v1422_v54, %v2094_v33  ;;  %v1443_v35 = vrot.slane %v1421_v1, %v2094_v33 }
 0x344   : > { %v1452_v29 = vcombine.low %v1436_v31, %v1450_v32  ;;  %v1451_v25 = vcombine.low %v1429_v61, %v1443_v35 }
 0x346   : > { %1557 = vmatprep.subr.mxu1 %v1452_v29 }
 0x347   : > { %1558 = vmatpush1.msra.mxu1 %v1451_v25 }
 0x348   : > { %1822 = vmatmul.mubr.msk.f32.vlgmr.msra.gmra.mxu1 %vm1523_vm11, %v1370_v2 }
 0x408   : > { %v1593_v36 = vpop.f32.mrf.mxu1 }
 0x40a   : > { %v1595_v41 = vpop.f32.mrf.mxu1 }
 0x40b   : > { %v1600_v42 = vcombine.low %v1593_v36, %v1595_v41 }
 0x40d   : > { %v1607_v43 = vrot.slane %v1600_v42, %v2094_v33 }
 0x40f   : > { %v1608_v45 = vcombine.high %v1607_v43, %v1607_v43  ;;  %v1615_v46 = vrot.slane %v1607_v43, %v2094_v33 }
 0x411   : > { %v1622_v50 = vrot.slane %v1608_v45, %v2094_v33  ;;  %v1628_v4 = vrot.slane %v1615_v46, %v2098_v39  ;;  %v1632_v49 = vrot.slane %v1615_v46, %v2100_v40 }
 0x413   : > { %v1645_v20 = vsel %vm624_vm2, %v1628_v4, -inf  ;;  %v1646_v22 = vsel %vm624_vm2, %v1632_v49, -inf  ;;  %v1636_v23 = vrot.slane %v1622_v50, %v2098_v39  ;;  %v1640_v3 = vrot.slane %v1622_v50, %v2100_v40 }
 0x414   : > { %v1647_v51 = vmax.f32 %v1645_v20, %v1646_v22 }
 0x415   : > { %v1650_v15 = vsel %vm624_vm2, %v1636_v23, -inf  ;;  %v1651_v16 = vsel %vm624_vm2, %v1640_v3, -inf }
 0x416   : > { %1648 = vmax.xlane.f32.xlu0 %v1647_v51  ;;  %v1652_v21 = vmax.f32 %v1650_v15, %v1651_v16 }
 0x418   : > { %1653 = vmax.xlane.f32.xlu1 %v1652_v21 }
 0x49f   : > { %v1649_v33 = vpop.xlane.xlu0 %1648 }
 0x4a0   : > { %v1660_v30 = vrot.slane %v1649_v33, %v2098_v39 }
 0x4a1   : > { %v1654_v34 = vpop.xlane.xlu1 %1653 }
 0x4a2   : > { %v1667_v44 = vsub.f32 %v1615_v46, %v1660_v30  ;;  %v1664_v47 = vrot.slane %v1654_v34, %v2098_v39 }
 0x4a4   : > { %v1669_v48 = vmul.f32 1.442695, %v1667_v44  ;;  %v1668_v59 = vsub.f32 %v1622_v50, %v1664_v47 }
 0x4a6   : > { %1893 = vpow2.f32 %v1669_v48  ;;  %v1671_v55 = vmul.f32 1.442695, %v1668_v59 }
 0x4a8   : > { %1895 = vpow2.f32 %v1671_v55 }
 0x4b3   : > { %v1894_v60 = vpop.eup %1893 }
 0x4b4   : > { %v1678_v56 = vrot.slane %v1894_v60, %v2098_v39  ;;  %v1682_v57 = vrot.slane %v1894_v60, %v2100_v40 }
 0x4b5   : > { %v1896_v58 = vpop.eup %1895 }
 0x4b6   : > { %v1695_v13 = vsel %vm624_vm2, %v1678_v56, 0.0  ;;  %v1696_v62 = vsel %vm624_vm2, %v1682_v57, 0.0  ;;  %v1686_v6 = vrot.slane %v1896_v58, %v2098_v39  ;;  %v1690_v7 = vrot.slane %v1896_v58, %v2100_v40 }
 0x4b7   : > { %v1697_v9 = vadd.f32 %v1696_v62, %v1695_v13 }
 0x4b8   : > { %v1700_v11 = vsel %vm624_vm2, %v1686_v6, 0.0  ;;  %v1701_v17 = vsel %vm624_vm2, %v1690_v7, 0.0 }
 0x4b9   : > { %1698 = vadd.xlane.f32.xlu0 %v1697_v9  ;;  %v1702_v63 = vadd.f32 %v1701_v17, %v1700_v11 }
 0x4bd   : > { %1703 = vadd.xlane.f32.xlu0 %v1702_v63 }
 0x542   : > { %v1699_v0 = vpop.xlane.xlu0 %1698 }
 0x543   : > { %1897 = vrcp.f32 %v1699_v0 }
 0x546   : > { %v1704_v19 = vpop.xlane.xlu0 %1703 }
 0x547   : > { %1899 = vrcp.f32 %v1704_v19 }
 0x550   : > { %v1898_v24 = vpop.eup %1897 }
 0x551   : > { %v1712_v26 = vrot.slane %v1898_v24, %v2098_v39 }
 0x553   : > { %v1719_v28 = vmul.f32 %v1894_v60, %v1712_v26 }
 0x554   : > { %v1900_v40 = vpop.eup %1899 }
 0x555   : > { %v1716_v27 = vrot.slane %v1900_v40, %v2098_v39 }
 0x557   : > { %v1720_v5 = vmul.f32 %v1896_v58, %v1716_v27 }
 0x559   : > { %v1723_v37 = vcombine.low %v1719_v28, %v1720_v5 }
 0x55b   : > { %1823 = vst.sshfl [vmem:[%s218_s16] sm:$0x33 pattern:$0x75316420] %v1723_v37 }
 0x55c   : > { %1914 = shalt.err (!%p1911_p3)
}
 0x55d   : > { %s1915_s9 = scalar_lea.hbm %s1746_s26, 64  ;;  %s1919_s12 = scalar_lea.hbm %s2455_s5, 128 }
 0x55e   : > { %p1916_p4 = scmp.ne.s32.totalorder %s1746_s26, %s1915_s9  ;;  %p1920_p9 = scmp.lt.s32.totalorder %s1746_s26, %s2455_s5 }
 0x55f   : > { %p1921_p10 = scmp.lt.s32.totalorder %s1919_s12, %s1915_s9 }
 0x560   : > { %p1917_p7 = pnand %p1916_p4, %p2036_p5 }
 0x561   : > { %p1922_p11 = por %p1921_p10, %p1920_p9 }
 0x562   : > { %p1918_p8 = pneg %p1917_p7 }
 0x564   : > { %p1923_p12 = pnand %p1922_p11, %p1918_p8 }
 0x566   : > { %1926 = shalt.err (!%p1923_p12)
}
 0x567   : > { %1847 = dma.vmem_to_hbm [thread:$0]  (%p2036_p5), %s1749_s17, 64, %s1746_s26, %s1734_s30  }
 0x568 PF: > { %p1853_p13 = scmp.ge.s32.totalorder %s1961_s21, 2  ;;  %s1760_s15 = sand.u32 1, %s1949_s18  }
 0x569   : > { %s1761_s16 = scalar_lea.sflag [#allocation3], %s1760_s15 }
 0x56a   : > { %p1850_p0 = pnand %p1853_p13, %p2040_p6 }
 0x56c   : > { %p1851_p1 = pneg %p1850_p0 }
 0x56e   : > { %1944 = dma.done.wait (%p1851_p1), %s1761_s16, 64  }
 0x56f   : > { %1946 = vsyncadd (%p1851_p1), %s1761_s16, 4294967232  ;;  %p15_p2 = scmp.ge.s32.totalorder %s2023_s24, 4   ;;  %s2458_s18 = smov %s1953_s19 }
 0x570   : > { %s2459_s19 = smov %s1957_s20  ;;  %s2460_s20 = smov %s2034_s27 }
 0x571   : > { %s2461_s21 = smov %s2023_s24  ;;  %17 = sbr.rel (!%p15_p2) target bundleno = 3 (0x3), region = 75 }
 0x576   :  { %1766 = vsyncpa [#allocation3], 1 }
 0x577   :  { %1768 = vsyncpa [#allocation3 + $0x1], 1 }

</bundles_post_ra>
